<compile_context>
chip_gen: v7x
topology: tpu7x:2x2x1
jax: 0.10.0
libtpu: 0.0.40
codegen_flags: <defaults>
</compile_context>

<pallas_src>
import math

import jax
import jax.numpy as jnp
from jax.experimental import pallas as pl
from jax.experimental.pallas import tpu as pltpu

EMBED_DIM = 32          # embed_dim of the MultiheadAttention module
NUM_HEADS = 4           # num_heads
HEAD_DIM = EMBED_DIM // NUM_HEADS


def mha_weights_kernel(q_ref, k_ref, wq_ref, wk_ref, bq_ref, bk_ref,
                       mask_ref, out_ref):
    # q_ref: (bn, L, E)   k_ref: (bn, S, E)        (f32 or bf16)
    # wq_ref/wk_ref: (H, E, d) per-head projection weights (q-scale folded in)
    # bq_ref/bk_ref: (H, 1, d) f32
    # mask_ref: (bn, 1, S) additive f32 mask (0.0 = keep, -1e30 = masked)
    # out_ref:  (bn, 1, L*S) f32  -- lane-dense output slab
    bn, L, E = q_ref.shape
    S = k_ref.shape[1]
    H, d = NUM_HEADS, HEAD_DIM
    G = H * bn
    f32 = jnp.float32

    # Fold heads and the local batch into a single leading batch axis
    # g = h*bn + b using LEADING-dim broadcasts / reshapes only (the
    # lane/sublane layout of every operand is untouched).
    xq = jnp.broadcast_to(q_ref[...][None], (H, bn, L, E)).reshape(G, L, E)
    xk = jnp.broadcast_to(k_ref[...][None], (H, bn, S, E)).reshape(G, S, E)
    wq = jnp.broadcast_to(wq_ref[...][:, None], (H, bn, E, d)).reshape(G, E, d)
    wk = jnp.broadcast_to(wk_ref[...][:, None], (H, bn, E, d)).reshape(G, E, d)
    bq = jnp.broadcast_to(bq_ref[...][:, None], (H, bn, 1, d)).reshape(G, 1, d)
    bk = jnp.broadcast_to(bk_ref[...][:, None], (H, bn, 1, d)).reshape(G, 1, d)

    # Batched q/k projections (one batched MXU matmul each, f32 accumulate;
    # the 1/sqrt(d) softmax scale is already folded into wq/bq).
    qh = jnp.einsum('gle,ged->gld', xq, wq, preferred_element_type=f32) + bq
    kh = jnp.einsum('gse,ged->gsd', xk, wk, preferred_element_type=f32) + bk

    # One batched score matmul for every (head, batch) pair: (G, L, S).
    s = jnp.einsum('gld,gsd->gls', qh, kh, preferred_element_type=f32)

    # Additive key-padding mask, shared across heads.
    m = jnp.broadcast_to(mask_ref[...], (H, bn, 1, S)).reshape(G, 1, S)
    s = s + m

    # Single shared softmax over the key axis (exact normalization).
    mx = jnp.max(s, axis=-1, keepdims=True)
    e = jnp.exp(s - mx)
    w = e / jnp.sum(e, axis=-1, keepdims=True)

    # Average over heads (PyTorch average_attn_weights=True): (bn, L, S).
    acc = jnp.mean(w.reshape(H, bn, L, S), axis=0)

    # Lane-dense store: pack the L query rows along the lane axis (explicit
    # lane-axis concat = sublane->lane relayout on XLU slack) so the final
    # store is one wide unmasked vst / dense HBM writeback instead of L masked
    # S(=8)-lane partial stores.
    out_ref[...] = jnp.concatenate(
        [acc[:, l:l + 1, :] for l in range(L)], axis=-1)      # (bn, 1, L*S)


def _use_bf16_operands():
    """bf16 MXU operands on bf16-native chips; keep f32 on v5e."""
    try:
        kind = jax.devices()[0].device_kind.lower()
    except Exception:
        return False
    return not any(t in kind for t in ("v5 lite", "v5lite", "v5e"))


def mha_attn_weights(x1, x2, mask, wq, wk, bq, bk, *, batch_block=None,
                     use_bf16=None):
    """x1: (L, N, E) query, x2: (S, N, E) key/value, mask: (N, S) bool.

    Returns the head-averaged attention weights (N, L, S) = MHA's 2nd output.
    """
    L, N, E = x1.shape
    S = x2.shape[0]
    assert E == EMBED_DIM
    H, d = NUM_HEADS, HEAD_DIM

    if use_bf16 is None:
        use_bf16 = _use_bf16_operands()
    cdt = jnp.bfloat16 if use_bf16 else jnp.float32

    q_in = jnp.transpose(x1, (1, 0, 2)).astype(cdt)            # (N, L, E)
    k_in = jnp.transpose(x2, (1, 0, 2)).astype(cdt)            # (N, S, E)

    scale = 1.0 / math.sqrt(d)
    # Per-head projection weights (H, E, d); softmax scale folded into q proj.
    wq_h = (wq.T * scale).reshape(E, H, d).transpose(1, 0, 2).astype(cdt)
    wk_h = wk.T.reshape(E, H, d).transpose(1, 0, 2).astype(cdt)
    bq_h = (bq * scale).reshape(H, 1, d).astype(jnp.float32)
    bk_h = bk.reshape(H, 1, d).astype(jnp.float32)

    # Additive key-padding mask.  Finite large-negative keeps fully-masked rows
    # NaN-free (uniform 1/S); PyTorch would return NaN there.
    # TODO(synk): pass the mask as bool + in-kernel select if S grows (4x DMA).
    mask_add = jnp.where(mask, -1e30, 0.0).astype(jnp.float32).reshape(N, 1, S)

    # Default: the whole batch in ONE grid step (overhead-bound toy sizes).
    # For real-sized N on v7x pass batch_block (e.g. N//2) to keep a parallel
    # axis for its 2 TensorCores; re-derive VMEM against its 64 MiB.
    bn = N if batch_block is None else min(batch_block, N)
    assert N % bn == 0, "batch_block must divide N"
    grid = (N // bn,)

    out_flat = pl.pallas_call(
        mha_weights_kernel,
        out_shape=jax.ShapeDtypeStruct((N, 1, L * S), jnp.float32),
        grid=grid,
        in_specs=[
            pl.BlockSpec((bn, L, E), lambda b: (b, 0, 0)),
            pl.BlockSpec((bn, S, E), lambda b: (b, 0, 0)),
            pl.BlockSpec((H, E, d), lambda b: (0, 0, 0)),
            pl.BlockSpec((H, E, d), lambda b: (0, 0, 0)),
            pl.BlockSpec((H, 1, d), lambda b: (0, 0, 0)),
            pl.BlockSpec((H, 1, d), lambda b: (0, 0, 0)),
            pl.BlockSpec((bn, 1, S), lambda b: (b, 0, 0)),
        ],
        out_specs=pl.BlockSpec((bn, 1, L * S), lambda b: (b, 0, 0)),
        compiler_params=pltpu.CompilerParams(dimension_semantics=("parallel",)),
    )(q_in, k_in, wq_h, wk_h, bq_h, bk_h, mask_add)

    return out_flat.reshape(N, L, S)


def _reference(x1, x2, mask, wq, wk, bq, bk):
    """Plain-JAX f32 reference of the same computation (for sanity check)."""
    q_in = jnp.transpose(x1, (1, 0, 2))               # (N, L, E)
    k_in = jnp.transpose(x2, (1, 0, 2))               # (N, S, E)
    q = q_in @ wq.T + bq
    k = k_in @ wk.T + bk
    N, L, E = q.shape
    S = k.shape[1]
    qh = q.reshape(N, L, NUM_HEADS, HEAD_DIM).transpose(0, 2, 1, 3)
    kh = k.reshape(N, S, NUM_HEADS, HEAD_DIM).transpose(0, 2, 1, 3)
    s = jnp.einsum('nhld,nhsd->nhls', qh, kh) / math.sqrt(HEAD_DIM)
    s = jnp.where(mask[:, None, None, :], -jnp.inf, s)
    w = jax.nn.softmax(s, axis=-1)
    return w.mean(axis=1)                             # (N, L, S)


if __name__ == "__main__":
    key = jax.random.PRNGKey(0)
    k1, k2, k3, k4, k5, k6, k7 = jax.random.split(key, 7)

    L, S, N, E = 8, 8, 2, EMBED_DIM

    # inputs in PyTorch MHA's default (seq, batch, embed) layout
    x1 = jax.random.normal(k1, (L, N, E), dtype=jnp.float32)   # query
    x2 = jax.random.normal(k2, (S, N, E), dtype=jnp.float32)   # key / value

    # key_padding_mask (N, S): True = ignore; guarantee >=1 unmasked key/row
    mask = jax.random.uniform(k3, (N, S)) < 0.3
    mask = mask.at[:, 0].set(False)

    # deterministic parameters of the q/k input projections
    # (slices of PyTorch's in_proj_weight / in_proj_bias)
    wq = jax.random.normal(k4, (E, E), dtype=jnp.float32) * 0.1
    wk = jax.random.normal(k5, (E, E), dtype=jnp.float32) * 0.1
    bq = jax.random.normal(k6, (E,), dtype=jnp.float32) * 0.1
    bk = jax.random.normal(k7, (E,), dtype=jnp.float32) * 0.1

    use_bf16 = _use_bf16_operands()
    out = mha_attn_weights(x1, x2, mask, wq, wk, bq, bk, use_bf16=use_bf16)
    out = jax.block_until_ready(out)

    ref = _reference(x1, x2, mask, wq, wk, bq, bk)
    assert out.shape == (N, L, S)
    atol, rtol = (2e-2, 5e-2) if use_bf16 else (2e-3, 2e-3)
    assert jnp.allclose(out, ref, atol=atol, rtol=rtol), \
        f"max abs diff {jnp.max(jnp.abs(out - ref))}"

    # TODO(synk): v1 (attn @ V and the output projection) is not computed --
    # the module returns only v2 (the attention weights).
    print("KERNEL_OK")
</pallas_src>

<mosaic_0001>
module attributes {stable_mosaic.version = 11 : i64} {
  func.func @mha_weights_kernel(%arg0: i32, %arg1: memref<2x8x32xbf16, #tpu.memory_space<vmem>>, %arg2: memref<2x8x32xbf16, #tpu.memory_space<vmem>>, %arg3: memref<4x32x8xbf16, #tpu.memory_space<vmem>>, %arg4: memref<4x32x8xbf16, #tpu.memory_space<vmem>>, %arg5: memref<4x1x8xf32, #tpu.memory_space<vmem>>, %arg6: memref<4x1x8xf32, #tpu.memory_space<vmem>>, %arg7: memref<2x1x8xf32, #tpu.memory_space<vmem>>, %arg8: memref<2x1x64xf32, #tpu.memory_space<vmem>>) attributes {dimension_semantics = [#tpu.dimension_semantics<parallel>], iteration_bounds = array<i64: 1>, scalar_prefetch = 0 : i64, scratch_operands = 0 : i64, tpu.core_type = #tpu.core_type<tc>, window_params = [{transform_indices = @transform_0, window_bounds = array<i64: 2, 8, 32>}, {transform_indices = @transform_1, window_bounds = array<i64: 2, 8, 32>}, {pipeline_mode = #tpu.pipeline_mode<synchronous>, transform_indices = @transform_2, window_bounds = array<i64: 4, 32, 8>}, {pipeline_mode = #tpu.pipeline_mode<synchronous>, transform_indices = @transform_3, window_bounds = array<i64: 4, 32, 8>}, {pipeline_mode = #tpu.pipeline_mode<synchronous>, transform_indices = @transform_4, window_bounds = array<i64: 4, 1, 8>}, {pipeline_mode = #tpu.pipeline_mode<synchronous>, transform_indices = @transform_5, window_bounds = array<i64: 4, 1, 8>}, {transform_indices = @transform_6, window_bounds = array<i64: 2, 1, 8>}, {transform_indices = @transform_7, window_bounds = array<i64: 2, 1, 64>}]} {
    %c0 = arith.constant 0 : index
    %c0_0 = arith.constant 0 : index
    %c0_1 = arith.constant 0 : index
    %0 = vector.load %arg1[%c0, %c0_0, %c0_1] : memref<2x8x32xbf16, #tpu.memory_space<vmem>>, vector<2x8x32xbf16>
    %1 = vector.shape_cast %0 : vector<2x8x32xbf16> to vector<1x2x8x32xbf16>
    %2 = vector.shape_cast %1 : vector<1x2x8x32xbf16> to vector<1x2x8x32xbf16>
    %3 = vector.broadcast %2 : vector<1x2x8x32xbf16> to vector<4x2x8x32xbf16>
    %4 = vector.shape_cast %3 : vector<4x2x8x32xbf16> to vector<8x8x32xbf16>
    %c0_2 = arith.constant 0 : index
    %c0_3 = arith.constant 0 : index
    %c0_4 = arith.constant 0 : index
    %5 = vector.load %arg2[%c0_2, %c0_3, %c0_4] : memref<2x8x32xbf16, #tpu.memory_space<vmem>>, vector<2x8x32xbf16>
    %6 = vector.shape_cast %5 : vector<2x8x32xbf16> to vector<1x2x8x32xbf16>
    %7 = vector.shape_cast %6 : vector<1x2x8x32xbf16> to vector<1x2x8x32xbf16>
    %8 = vector.broadcast %7 : vector<1x2x8x32xbf16> to vector<4x2x8x32xbf16>
    %9 = vector.shape_cast %8 : vector<4x2x8x32xbf16> to vector<8x8x32xbf16>
    %c0_5 = arith.constant 0 : index
    %c0_6 = arith.constant 0 : index
    %c0_7 = arith.constant 0 : index
    %10 = vector.load %arg3[%c0_5, %c0_6, %c0_7] : memref<4x32x8xbf16, #tpu.memory_space<vmem>>, vector<4x32x8xbf16>
    %11 = vector.shape_cast %10 : vector<4x32x8xbf16> to vector<4x1x32x8xbf16>
    %12 = vector.shape_cast %11 : vector<4x1x32x8xbf16> to vector<4x1x32x8xbf16>
    %13 = vector.broadcast %12 : vector<4x1x32x8xbf16> to vector<4x2x32x8xbf16>
    %14 = vector.shape_cast %13 : vector<4x2x32x8xbf16> to vector<8x32x8xbf16>
    %c0_8 = arith.constant 0 : index
    %c0_9 = arith.constant 0 : index
    %c0_10 = arith.constant 0 : index
    %15 = vector.load %arg4[%c0_8, %c0_9, %c0_10] : memref<4x32x8xbf16, #tpu.memory_space<vmem>>, vector<4x32x8xbf16>
    %16 = vector.shape_cast %15 : vector<4x32x8xbf16> to vector<4x1x32x8xbf16>
    %17 = vector.shape_cast %16 : vector<4x1x32x8xbf16> to vector<4x1x32x8xbf16>
    %18 = vector.broadcast %17 : vector<4x1x32x8xbf16> to vector<4x2x32x8xbf16>
    %19 = vector.shape_cast %18 : vector<4x2x32x8xbf16> to vector<8x32x8xbf16>
    %c0_11 = arith.constant 0 : index
    %c0_12 = arith.constant 0 : index
    %c0_13 = arith.constant 0 : index
    %20 = vector.load %arg5[%c0_11, %c0_12, %c0_13] : memref<4x1x8xf32, #tpu.memory_space<vmem>>, vector<4x1x8xf32>
    %21 = vector.shape_cast %20 : vector<4x1x8xf32> to vector<4x1x1x8xf32>
    %22 = vector.shape_cast %21 : vector<4x1x1x8xf32> to vector<4x1x1x8xf32>
    %23 = vector.broadcast %22 : vector<4x1x1x8xf32> to vector<4x2x1x8xf32>
    %24 = vector.shape_cast %23 : vector<4x2x1x8xf32> to vector<8x1x8xf32>
    %c0_14 = arith.constant 0 : index
    %c0_15 = arith.constant 0 : index
    %c0_16 = arith.constant 0 : index
    %25 = vector.load %arg6[%c0_14, %c0_15, %c0_16] : memref<4x1x8xf32, #tpu.memory_space<vmem>>, vector<4x1x8xf32>
    %26 = vector.shape_cast %25 : vector<4x1x8xf32> to vector<4x1x1x8xf32>
    %27 = vector.shape_cast %26 : vector<4x1x1x8xf32> to vector<4x1x1x8xf32>
    %28 = vector.broadcast %27 : vector<4x1x1x8xf32> to vector<4x2x1x8xf32>
    %29 = vector.shape_cast %28 : vector<4x2x1x8xf32> to vector<8x1x8xf32>
    "tpu.trace_start"() <{level = 10 : i32, message = "gle,ged->gld"}> : () -> ()
    %cst = arith.constant dense<0.000000e+00> : vector<8x8x8xf32>
    %30 = tpu.matmul %4, %14, %cst {dimension_numbers = #tpu.dot_dimension_numbers<[2], [1], [1], [2], [0, 0, 0, 1, 1, 2], [0], [0]>} : vector<8x8x32xbf16>, vector<8x32x8xbf16>, vector<8x8x8xf32> -> vector<8x8x8xf32>
    "tpu.trace_stop"() : () -> ()
    %31 = vector.broadcast %24 : vector<8x1x8xf32> to vector<8x8x8xf32>
    %32 = arith.addf %30, %31 : vector<8x8x8xf32>
    "tpu.trace_start"() <{level = 10 : i32, message = "gse,ged->gsd"}> : () -> ()
    %cst_17 = arith.constant dense<0.000000e+00> : vector<8x8x8xf32>
    %33 = tpu.matmul %9, %19, %cst_17 {dimension_numbers = #tpu.dot_dimension_numbers<[2], [1], [1], [2], [0, 0, 0, 1, 1, 2], [0], [0]>} : vector<8x8x32xbf16>, vector<8x32x8xbf16>, vector<8x8x8xf32> -> vector<8x8x8xf32>
    "tpu.trace_stop"() : () -> ()
    %34 = vector.broadcast %29 : vector<8x1x8xf32> to vector<8x8x8xf32>
    %35 = arith.addf %33, %34 : vector<8x8x8xf32>
    "tpu.trace_start"() <{level = 10 : i32, message = "gld,gsd->gls"}> : () -> ()
    %cst_18 = arith.constant dense<0.000000e+00> : vector<8x8x8xf32>
    %36 = tpu.matmul %32, %35, %cst_18 {dimension_numbers = #tpu.dot_dimension_numbers<[2], [2], [1], [1], [0, 0, 0, 1, 1, 1], [0], [0]>} : vector<8x8x8xf32>, vector<8x8x8xf32>, vector<8x8x8xf32> -> vector<8x8x8xf32>
    "tpu.trace_stop"() : () -> ()
    %c0_19 = arith.constant 0 : index
    %c0_20 = arith.constant 0 : index
    %c0_21 = arith.constant 0 : index
    %37 = vector.load %arg7[%c0_19, %c0_20, %c0_21] : memref<2x1x8xf32, #tpu.memory_space<vmem>>, vector<2x1x8xf32>
    %38 = vector.shape_cast %37 : vector<2x1x8xf32> to vector<1x2x1x8xf32>
    %39 = vector.broadcast %38 : vector<1x2x1x8xf32> to vector<4x2x1x8xf32>
    %40 = vector.shape_cast %39 : vector<4x2x1x8xf32> to vector<8x1x8xf32>
    %41 = vector.broadcast %40 : vector<8x1x8xf32> to vector<8x8x8xf32>
    %42 = arith.addf %36, %41 : vector<8x8x8xf32>
    %cst_22 = arith.constant dense<0xFF800000> : vector<8x8xf32>
    %43 = vector.multi_reduction <maximumf>, %42, %cst_22 [2] : vector<8x8x8xf32> to vector<8x8xf32>
    %44 = vector.shape_cast %43 : vector<8x8xf32> to vector<8x8x1xf32>
    %45 = vector.broadcast %44 : vector<8x8x1xf32> to vector<8x8x8xf32>
    %46 = arith.subf %42, %45 : vector<8x8x8xf32>
    %47 = math.exp %46 : vector<8x8x8xf32>
    %cst_23 = arith.constant dense<0.000000e+00> : vector<8x8xf32>
    %48 = vector.multi_reduction <add>, %47, %cst_23 [2] : vector<8x8x8xf32> to vector<8x8xf32>
    %49 = vector.shape_cast %48 : vector<8x8xf32> to vector<8x8x1xf32>
    %50 = vector.broadcast %49 : vector<8x8x1xf32> to vector<8x8x8xf32>
    %51 = arith.divf %47, %50 : vector<8x8x8xf32>
    %52 = vector.shape_cast %51 : vector<8x8x8xf32> to vector<4x2x8x8xf32>
    %cst_24 = arith.constant dense<0.000000e+00> : vector<2x8x8xf32>
    %53 = vector.multi_reduction <add>, %52, %cst_24 [0] : vector<4x2x8x8xf32> to vector<2x8x8xf32>
    %cst_25 = arith.constant 4.000000e+00 : f32
    %54 = vector.broadcast %cst_25 : f32 to vector<2x8x8xf32>
    %55 = arith.divf %53, %54 : vector<2x8x8xf32>
    %56 = vector.extract_strided_slice %55 {offsets = [0, 0, 0], sizes = [2, 1, 8], strides = [1, 1, 1]} : vector<2x8x8xf32> to vector<2x1x8xf32>
    %57 = vector.extract_strided_slice %55 {offsets = [0, 1, 0], sizes = [2, 1, 8], strides = [1, 1, 1]} : vector<2x8x8xf32> to vector<2x1x8xf32>
    %58 = vector.extract_strided_slice %55 {offsets = [0, 2, 0], sizes = [2, 1, 8], strides = [1, 1, 1]} : vector<2x8x8xf32> to vector<2x1x8xf32>
    %59 = vector.extract_strided_slice %55 {offsets = [0, 3, 0], sizes = [2, 1, 8], strides = [1, 1, 1]} : vector<2x8x8xf32> to vector<2x1x8xf32>
    %60 = vector.extract_strided_slice %55 {offsets = [0, 4, 0], sizes = [2, 1, 8], strides = [1, 1, 1]} : vector<2x8x8xf32> to vector<2x1x8xf32>
    %61 = vector.extract_strided_slice %55 {offsets = [0, 5, 0], sizes = [2, 1, 8], strides = [1, 1, 1]} : vector<2x8x8xf32> to vector<2x1x8xf32>
    %62 = vector.extract_strided_slice %55 {offsets = [0, 6, 0], sizes = [2, 1, 8], strides = [1, 1, 1]} : vector<2x8x8xf32> to vector<2x1x8xf32>
    %63 = vector.extract_strided_slice %55 {offsets = [0, 7, 0], sizes = [2, 1, 8], strides = [1, 1, 1]} : vector<2x8x8xf32> to vector<2x1x8xf32>
    %64 = tpu.concatenate %56, %57, %58, %59, %60, %61, %62, %63 in 2 : vector<2x1x8xf32>, vector<2x1x8xf32>, vector<2x1x8xf32>, vector<2x1x8xf32>, vector<2x1x8xf32>, vector<2x1x8xf32>, vector<2x1x8xf32>, vector<2x1x8xf32> -> vector<2x1x64xf32>
    %c0_26 = arith.constant 0 : index
    %c0_27 = arith.constant 0 : index
    %c0_28 = arith.constant 0 : index
    %65 = vector.load %arg8[%c0_26, %c0_27, %c0_28] : memref<2x1x64xf32, #tpu.memory_space<vmem>>, vector<2x1x64xf32>
    tpu.vector_store %arg8[%c0_26, %c0_27, %c0_28], %64 {strides = array<i32>} : memref<2x1x64xf32, #tpu.memory_space<vmem>>, vector<2x1x64xf32>,
    return
  }
  func.func @transform_0(%arg0: i32) -> (i32, i32, i32) {
    %c0_i32 = arith.constant 0 : i32
    %c0_i32_0 = arith.constant 0 : i32
    %c0_i32_1 = arith.constant 0 : i32
    return %arg0, %c0_i32, %c0_i32_0 : i32, i32, i32
  }
  func.func @transform_1(%arg0: i32) -> (i32, i32, i32) {
    %c0_i32 = arith.constant 0 : i32
    %c0_i32_0 = arith.constant 0 : i32
    %c0_i32_1 = arith.constant 0 : i32
    return %arg0, %c0_i32, %c0_i32_0 : i32, i32, i32
  }
  func.func @transform_2(%arg0: i32) -> (i32, i32, i32) {
    %c0_i32 = arith.constant 0 : i32
    %c0_i32_0 = arith.constant 0 : i32
    %c0_i32_1 = arith.constant 0 : i32
    %c0_i32_2 = arith.constant 0 : i32
    return %c0_i32, %c0_i32_0, %c0_i32_1 : i32, i32, i32
  }
  func.func @transform_3(%arg0: i32) -> (i32, i32, i32) {
    %c0_i32 = arith.constant 0 : i32
    %c0_i32_0 = arith.constant 0 : i32
    %c0_i32_1 = arith.constant 0 : i32
    %c0_i32_2 = arith.constant 0 : i32
    return %c0_i32, %c0_i32_0, %c0_i32_1 : i32, i32, i32
  }
  func.func @transform_4(%arg0: i32) -> (i32, i32, i32) {
    %c0_i32 = arith.constant 0 : i32
    %c0_i32_0 = arith.constant 0 : i32
    %c0_i32_1 = arith.constant 0 : i32
    %c0_i32_2 = arith.constant 0 : i32
    return %c0_i32, %c0_i32_0, %c0_i32_1 : i32, i32, i32
  }
  func.func @transform_5(%arg0: i32) -> (i32, i32, i32) {
    %c0_i32 = arith.constant 0 : i32
    %c0_i32_0 = arith.constant 0 : i32
    %c0_i32_1 = arith.constant 0 : i32
    %c0_i32_2 = arith.constant 0 : i32
    return %c0_i32, %c0_i32_0, %c0_i32_1 : i32, i32, i32
  }
  func.func @transform_6(%arg0: i32) -> (i32, i32, i32) {
    %c0_i32 = arith.constant 0 : i32
    %c0_i32_0 = arith.constant 0 : i32
    %c0_i32_1 = arith.constant 0 : i32
    return %arg0, %c0_i32, %c0_i32_0 : i32, i32, i32
  }
  func.func @transform_7(%arg0: i32) -> (i32, i32, i32) {
    %c0_i32 = arith.constant 0 : i32
    %c0_i32_0 = arith.constant 0 : i32
    %c0_i32_1 = arith.constant 0 : i32
    return %arg0, %c0_i32, %c0_i32_0 : i32, i32, i32
  }
}

</mosaic_0001>

<bundles_post_ra>
// kernel: tpu_custom_call.1
= control target key start
LH: loop header
LB: loop body
LE: loop exit
PB: predicated region body
PF: predicated region fallthrough
CT: control target
= control target key end

     0   :  { %v2066_v1 = vmov 0.0   ;;  %vm2067_vm0 = vmmov 0   ;;  %vm108_vm1 = vcmask 261120   ;;  %s2409_s0 = inlined_call_operand.vmem [shape: bf16[2,8,32], index: 0, kind: input, shape index: {}]   ;;  %s2410_s1 = inlined_call_operand.vmem [shape: bf16[2,8,32], index: 1, kind: input, shape index: {}]   ;;  %s2411_s2 = inlined_call_operand.vmem [shape: bf16[4,32,8], index: 2, kind: input, shape index: {}]   ;;  %s2412_s3 = inlined_call_operand.vmem [shape: bf16[4,32,8], index: 3, kind: input, shape index: {}]   ;;  %s2413_s4 = inlined_call_operand.vmem [shape: f32[4,1,8], index: 4, kind: input, shape index: {}]   ;;  %s2414_s5 = inlined_call_operand.vmem [shape: f32[4,1,8], index: 5, kind: input, shape index: {}]   ;;  %s2415_s6 = inlined_call_operand.vmem [shape: f32[2,1,8], index: 6, kind: input, shape index: {}]   ;;  %s2416_s7 = inlined_call_operand.hbm [shape: f32[2,1,64], index: 7, kind: output, shape index: {}]  }
   0x1   :  { %v1994_v0 = vld [vmem:[%s2411_s2] sm:$0xff]   ;;  %1815 = vmatprep.subr.bf16.mxu0 %v2066_v1  ;;  %1823 = vmatprep.subr.bf16.mxu1 %v2066_v1  ;;  %v1995_v2 = vld [vmem:[%s2411_s2 + $0x8] sm:$0xff]   ;;  %v1996_v5 = vld [vmem:[%s2411_s2 + $0x10] sm:$0xff]  }
   0x2   :  { %1816 = vmatpush3.bf16.msra.mxu0 %v1994_v0  ;;  %1824 = vmatpush3.bf16.msra.mxu1 %v1994_v0  ;;  %v28_v3 = vld [vmem:[%s2409_s0] sm:$0xf]  ;;  %v29_v4 = vld [vmem:[%s2409_s0 + $0x4] sm:$0xf]  ;;  %v1997_v6 = vld [vmem:[%s2411_s2 + $0x18] sm:$0xff]  }
   0x3   :  { %1817 = vmatprep.subr.bf16.mxu0 %v2066_v1  ;;  %1825 = vmatprep.subr.bf16.mxu1 %v2066_v1  ;;  %v1998_v7 = vld [vmem:[%s2411_s2 + $0x20] sm:$0xff]  }
   0x4   :  { %1819 = vmatprep.mubr.msk.bf16.mxu0 %vm2067_vm0, %v2066_v1  ;;  %1827 = vmatprep.mubr.msk.bf16.mxu1 %vm2067_vm0, %v2066_v1 }
   0x6   :  { %1818 = vmatpush3.bf16.msra.mxu0 %v1995_v2  ;;  %1826 = vmatpush3.bf16.msra.mxu1 %v1995_v2 }
   0x7   :  { %1831 = vmatprep.subr.bf16.mxu0 %v2066_v1  ;;  %1839 = vmatprep.subr.bf16.mxu1 %v2066_v1 }
   0x9   :  { %1820 = vmatmul.mubr.msk.bf16.vlgmr.msra.gmra.mrb[0].mxu0 %vm108_vm1, %v28_v3  ;;  %1828 = vmatmul.mubr.msk.bf16.vlgmr.msra.gmra.mrb[0].mxu1 %vm108_vm1, %v29_v4 }
   0xa   :  { %1832 = vmatpush3.bf16.msra.mxu0 %v1996_v5  ;;  %1840 = vmatpush3.bf16.msra.mxu1 %v1996_v5 }
   0xb   :  { %1833 = vmatprep.subr.bf16.mxu0 %v2066_v1  ;;  %1841 = vmatprep.subr.bf16.mxu1 %v2066_v1 }
   0xc   :  { %1835 = vmatprep.mubr.msk.bf16.mxu0 %vm2067_vm0, %v2066_v1  ;;  %1843 = vmatprep.mubr.msk.bf16.mxu1 %vm2067_vm0, %v2066_v1 }
   0xe   :  { %1834 = vmatpush3.bf16.msra.mxu0 %v1997_v6  ;;  %1842 = vmatpush3.bf16.msra.mxu1 %v1997_v6 }
   0xf   :  { %1847 = vmatprep.subr.bf16.mxu0 %v2066_v1  ;;  %1855 = vmatprep.subr.bf16.mxu1 %v2066_v1 }
  0x11   :  { %1836 = vmatmul.mubr.msk.bf16.vlgmr.msra.gmra.mrb[4].mxu0 %vm108_vm1, %v28_v3  ;;  %1844 = vmatmul.mubr.msk.bf16.vlgmr.msra.gmra.mrb[4].mxu1 %vm108_vm1, %v29_v4 }
  0x12   :  { %12 = vsyncpa [#allocation3], 0  ;;  %1848 = vmatpush3.bf16.msra.mxu0 %v1998_v7  ;;  %1856 = vmatpush3.bf16.msra.mxu1 %v1998_v7  ;;  %v1999_v8 = vld [vmem:[%s2411_s2 + $0x28] sm:$0xff]   ;;  %v2000_v9 = vld [vmem:[%s2411_s2 + $0x30] sm:$0xff]   ;;  %vm883_vm2 = vcmask 64512   ;;  %s2069_s30 = smov 16  }
  0x13   :  { %1849 = vmatprep.subr.bf16.mxu0 %v2066_v1  ;;  %1857 = vmatprep.subr.bf16.mxu1 %v2066_v1  ;;  %v2001_v10 = vld [vmem:[%s2411_s2 + $0x38] sm:$0xff]   ;;  %v2002_v11 = vld [vmem:[%s2412_s3] sm:$0xff]   ;;  %v2003_v12 = vld [vmem:[%s2412_s3 + $0x8] sm:$0xff]   ;;  %s2071_s8 = smov 32   ;;  %s2072_s9 = smov 40   ;;  %vm1657_vm3 = vcmask 130048  }
  0x14   :  { %1851 = vmatprep.mubr.msk.bf16.mxu0 %vm2067_vm0, %v2066_v1  ;;  %1859 = vmatprep.mubr.msk.bf16.mxu1 %vm2067_vm0, %v2066_v1  ;;  %v30_v13 = vld [vmem:[%s2410_s1] sm:$0xf]  ;;  %v31_v14 = vld [vmem:[%s2410_s1 + $0x4] sm:$0xf]  ;;  %v2004_v15 = vld [vmem:[%s2412_s3 + $0x10] sm:$0xff]   ;;  %s2070_s1 = smov 24  }
  0x15   :  { %v2005_v16 = vld [vmem:[%s2412_s3 + $0x18] sm:$0xff]   ;;  %v2006_v17 = vld [vmem:[%s2412_s3 + $0x20] sm:$0xff]   ;;  %v2007_v18 = vld [vmem:[%s2412_s3 + $0x28] sm:$0xff]   ;;  %s2073_s10 = smov 48   ;;  %s2074_s11 = smov 56   ;;  %vm1660_vm4 = vcmask 195584  }
  0x16   :  { %1850 = vmatpush3.bf16.msra.mxu0 %v1999_v8  ;;  %1858 = vmatpush3.bf16.msra.mxu1 %v1999_v8  ;;  %v2008_v19 = vld [vmem:[%s2412_s3 + $0x30] sm:$0xff]   ;;  %v2009_v20 = vld [vmem:[%s2412_s3 + $0x38] sm:$0xff]   ;;  %v1713_v53 = vld [vmem:[%s2414_s5] ss:$0 sm:$0xff]  ;;  %vm1665_vm5 = vcmask 326656   ;;  %vm1668_vm6 = vcmask 392192  }
  0x17   :  { %1863 = vmatprep.subr.bf16.mxu0 %v2066_v1  ;;  %1871 = vmatprep.subr.bf16.mxu1 %v2066_v1  ;;  %v1693_v56 = vld [vmem:[%s2413_s4] ss:$0 sm:$0xff]  ;;  %v1694_v7 = vld [vmem:[%s2413_s4 + $0x1] ss:$0 sm:$0xff]  ;;  %vm1671_vm7 = vcmask 457728   ;;  %vm1674_vm8 = vcmask 516096  }
  0x18   :  { %s2075_s12 = smov [#allocation2]  }
  0x19   :  { %1852 = vmatmul.mubr.msk.bf16.vlgmr.msra.gmra.mrb[8].mxu0 %vm108_vm1, %v28_v3  ;;  %1860 = vmatmul.mubr.msk.bf16.vlgmr.msra.gmra.mrb[8].mxu1 %vm108_vm1, %v29_v4  ;;  %s1682_s0 = sshll.u32 %s2075_s12, 4  ;;  %s1683_s0 = int_to_ptr.vmem [resolvable:$true] %s1682_s0 }
  0x1a   :  { %1864 = vmatpush3.bf16.msra.mxu0 %v2000_v9  ;;  %1872 = vmatpush3.bf16.msra.mxu1 %v2000_v9  ;;  %s2042_s13 = scalar_lea.vmem %s1683_s0, 32  ;;  %p2047_p1 = scmp.lt.s32.totalorder %s1683_s0, %s1683_s0 }
  0x1b   :  { %1865 = vmatprep.subr.bf16.mxu0 %v2066_v1  ;;  %1873 = vmatprep.subr.bf16.mxu1 %v2066_v1  ;;  %p2043_p0 = scmp.ne.s32.totalorder %s1683_s0, %s2042_s13  ;;  %p2048_p2 = scmp.lt.s32.totalorder %s2042_s13, %s2042_s13 }
  0x1c   :  { %1867 = vmatprep.mubr.msk.bf16.mxu0 %vm2067_vm0, %v2066_v1  ;;  %1875 = vmatprep.mubr.msk.bf16.mxu1 %vm2067_vm0, %v2066_v1 }
  0x1d   :  { %p2049_p3 = por %p2048_p2, %p2047_p1 }
  0x1e   :  { %1866 = vmatpush3.bf16.msra.mxu0 %v2001_v10  ;;  %1874 = vmatpush3.bf16.msra.mxu1 %v2001_v10 }
  0x1f   :  { %1879 = vmatprep.subr.bf16.mxu0 %v2066_v1  ;;  %1887 = vmatprep.subr.bf16.mxu1 %v2066_v1  ;;  %p2050_p4 = pnand %p2049_p3, %p2043_p0 }
  0x21   :  { %1868 = vmatmul.mubr.msk.bf16.vlgmr.msra.gmra.mrb[12].mxu0 %vm108_vm1, %v28_v3  ;;  %1876 = vmatmul.mubr.msk.bf16.vlgmr.msra.gmra.mrb[12].mxu1 %vm108_vm1, %v29_v4  ;;  %v1714_v4 = vld [vmem:[%s2414_s5 + $0x1] ss:$0 sm:$0xff] }
  0x22   :  { %1880 = vmatpush3.bf16.msra.mxu0 %v2002_v11  ;;  %1888 = vmatpush3.bf16.msra.mxu1 %v2002_v11 }
  0x23   :  { %1881 = vmatprep.subr.bf16.mxu0 %v2066_v1  ;;  %1889 = vmatprep.subr.bf16.mxu1 %v2066_v1 }
  0x24   :  { %1883 = vmatprep.mubr.msk.bf16.mxu0 %vm2067_vm0, %v2066_v1  ;;  %1891 = vmatprep.mubr.msk.bf16.mxu1 %vm2067_vm0, %v2066_v1 }
  0x26   :  { %1882 = vmatpush3.bf16.msra.mxu0 %v2003_v12  ;;  %1890 = vmatpush3.bf16.msra.mxu1 %v2003_v12 }
  0x27   :  { %1895 = vmatprep.subr.bf16.mxu0 %v2066_v1  ;;  %1903 = vmatprep.subr.bf16.mxu1 %v2066_v1 }
  0x29   :  { %1884 = vmatmul.mubr.msk.bf16.vlgmr.msra.gmra.mrb[16].mxu0 %vm108_vm1, %v30_v13  ;;  %1892 = vmatmul.mubr.msk.bf16.vlgmr.msra.gmra.mrb[16].mxu1 %vm108_vm1, %v31_v14 }
  0x2a   :  { %1896 = vmatpush3.bf16.msra.mxu0 %v2004_v15  ;;  %1904 = vmatpush3.bf16.msra.mxu1 %v2004_v15 }
  0x2b   :  { %1897 = vmatprep.subr.bf16.mxu0 %v2066_v1  ;;  %1905 = vmatprep.subr.bf16.mxu1 %v2066_v1 }
  0x2c   :  { %1899 = vmatprep.mubr.msk.bf16.mxu0 %vm2067_vm0, %v2066_v1  ;;  %1907 = vmatprep.mubr.msk.bf16.mxu1 %vm2067_vm0, %v2066_v1 }
  0x2e   :  { %1898 = vmatpush3.bf16.msra.mxu0 %v2005_v16  ;;  %1906 = vmatpush3.bf16.msra.mxu1 %v2005_v16 }
  0x2f   :  { %1911 = vmatprep.subr.bf16.mxu0 %v2066_v1  ;;  %1919 = vmatprep.subr.bf16.mxu1 %v2066_v1 }
  0x31   :  { %1900 = vmatmul.mubr.msk.bf16.vlgmr.msra.gmra.mrb[20].mxu0 %vm108_vm1, %v30_v13  ;;  %1908 = vmatmul.mubr.msk.bf16.vlgmr.msra.gmra.mrb[20].mxu1 %vm108_vm1, %v31_v14 }
  0x32   :  { %1912 = vmatpush3.bf16.msra.mxu0 %v2006_v17  ;;  %1920 = vmatpush3.bf16.msra.mxu1 %v2006_v17 }
  0x33   :  { %1913 = vmatprep.subr.bf16.mxu0 %v2066_v1  ;;  %1921 = vmatprep.subr.bf16.mxu1 %v2066_v1 }
  0x34   :  { %1915 = vmatprep.mubr.msk.bf16.mxu0 %vm2067_vm0, %v2066_v1  ;;  %1923 = vmatprep.mubr.msk.bf16.mxu1 %vm2067_vm0, %v2066_v1 }
  0x36   :  { %1914 = vmatpush3.bf16.msra.mxu0 %v2007_v18  ;;  %1922 = vmatpush3.bf16.msra.mxu1 %v2007_v18  ;;  %v1715_v18 = vld [vmem:[%s2414_s5 + $0x2] ss:$0 sm:$0xff] }
  0x37   :  { %1927 = vmatprep.subr.bf16.mxu0 %v2066_v1  ;;  %1935 = vmatprep.subr.bf16.mxu1 %v2066_v1 }
  0x39   :  { %1916 = vmatmul.mubr.msk.bf16.vlgmr.msra.gmra.mrb[24].mxu0 %vm108_vm1, %v30_v13  ;;  %1924 = vmatmul.mubr.msk.bf16.vlgmr.msra.gmra.mrb[24].mxu1 %vm108_vm1, %v31_v14 }
  0x3a   :  { %1928 = vmatpush3.bf16.msra.mxu0 %v2008_v19  ;;  %1936 = vmatpush3.bf16.msra.mxu1 %v2008_v19 }
  0x3b   :  { %1929 = vmatprep.subr.bf16.mxu0 %v2066_v1  ;;  %1937 = vmatprep.subr.bf16.mxu1 %v2066_v1 }
  0x3c   :  { %1931 = vmatprep.mubr.msk.bf16.mxu0 %vm2067_vm0, %v2066_v1  ;;  %1939 = vmatprep.mubr.msk.bf16.mxu1 %vm2067_vm0, %v2066_v1 }
  0x3e   :  { %1930 = vmatpush3.bf16.msra.mxu0 %v2009_v20  ;;  %1938 = vmatpush3.bf16.msra.mxu1 %v2009_v20 }
  0x3f   :  { %1943 = vmatprep.subr.mxu0 %v2066_v1  ;;  %1948 = vmatprep.subr.mxu1 %v2066_v1 }
  0x41   :  { %1932 = vmatmul.mubr.msk.bf16.vlgmr.msra.gmra.mrb[28].mxu0 %vm108_vm1, %v30_v13  ;;  %1940 = vmatmul.mubr.msk.bf16.vlgmr.msra.gmra.mrb[28].mxu1 %vm108_vm1, %v31_v14 }
  0x42   :  { %1945 = vmatprep.mubr.msk.f32.mxu0 %vm2067_vm0, %v2066_v1  ;;  %1950 = vmatprep.mubr.msk.f32.mxu1 %vm2067_vm0, %v2066_v1 }
  0xdc   :  { %v189_v21 = vpop.f32.mrb[0].mxu1  ;;  %v146_v22 = vpop.f32.mrb[0].mxu0 }
  0xdd   :  { %v1829_v23 = vpop.f32.mrb[1].mxu1  ;;  %v1821_v24 = vpop.f32.mrb[1].mxu0  ;;  %v190_v2 = vadd.f32 %v1693_v56, %v189_v21  ;;  %v147_v3 = vadd.f32 %v1693_v56, %v146_v22  ;;  %v1695_v21 = vld [vmem:[%s2413_s4 + $0x2] ss:$0 sm:$0xff] }
  0xde   :  { %v192_v25 = vpop.f32.mrb[2].mxu1  ;;  %v149_v26 = vpop.f32.mrb[2].mxu0 }
  0xdf   :  { %v1830_v27 = vpop.f32.mrb[3].mxu1  ;;  %v1822_v28 = vpop.f32.mrb[3].mxu0 }
  0xe4   :  { %v281_v29 = vpop.f32.mrb[4].mxu1  ;;  %v241_v30 = vpop.f32.mrb[4].mxu0 }
  0xe5   :  { %v1845_v31 = vpop.f32.mrb[5].mxu1  ;;  %v1837_v32 = vpop.f32.mrb[5].mxu0  ;;  %v282_v16 = vadd.f32 %v1694_v7, %v281_v29  ;;  %v242_v17 = vadd.f32 %v1694_v7, %v241_v30 }
  0xe6   :  { %v284_v33 = vpop.f32.mrb[6].mxu1  ;;  %v244_v34 = vpop.f32.mrb[6].mxu0  ;;  %v1716_v32 = vld [vmem:[%s2414_s5 + $0x3] ss:$0 sm:$0xff] }
  0xe7   :  { %v1846_v35 = vpop.f32.mrb[7].mxu1  ;;  %v1838_v36 = vpop.f32.mrb[7].mxu0 }
  0xe8   :  { %v1696_v35 = vld [vmem:[%s2413_s4 + $0x3] ss:$0 sm:$0xff] }
  0xec   :  { %v2263_v37 = vpop.f32.mrb[8].mxu1  ;;  %v2265_v38 = vpop.f32.mrb[8].mxu0 }
  0xed   :  { %v1861_v39 = vpop.f32.mrb[9].mxu1  ;;  %v1853_v40 = vpop.f32.mrb[9].mxu0  ;;  %v374_v30 = vadd.f32 %v1695_v21, %v2263_v37  ;;  %v334_v31 = vadd.f32 %v1695_v21, %v2265_v38 }
  0xee   :  { %v376_v41 = vpop.f32.mrb[10].mxu1  ;;  %v336_v42 = vpop.f32.mrb[10].mxu0 }
  0xef   :  { %v1862_v43 = vpop.f32.mrb[11].mxu1  ;;  %v1854_v44 = vpop.f32.mrb[11].mxu0 }
  0xf4   :  { %v2267_v45 = vpop.f32.mrb[12].mxu1  ;;  %v2269_v46 = vpop.f32.mrb[12].mxu0 }
  0xf5   :  { %v1877_v47 = vpop.f32.mrb[13].mxu1  ;;  %v1869_v48 = vpop.f32.mrb[13].mxu0  ;;  %v426_v44 = vadd.f32 %v1696_v35, %v2269_v46 }
  0xf6   :  { %v468_v49 = vpop.f32.mrb[14].mxu1  ;;  %v428_v50 = vpop.f32.mrb[14].mxu0  ;;  %v1733_v47 = vld [vmem:[%s2415_s6] ss:$0 sm:$0xff] }
  0xf7   :  { %v1878_v51 = vpop.f32.mrb[15].mxu1  ;;  %v1870_v52 = vpop.f32.mrb[15].mxu0  ;;  %v1734_v49 = vld [vmem:[%s2415_s6 + $0x1] ss:$0 sm:$0xff]  ;;  %s2068_s6 = smov 8  }
  0xfc   :  { %v544_v54 = vpop.f32.mrb[16].mxu0  ;;  %v587_v55 = vpop.f32.mrb[16].mxu1 }
  0xfd   :  { %v545_v57 = vadd.f32 %v1713_v53, %v544_v54  ;;  %v588_v58 = vadd.f32 %v1713_v53, %v587_v55  ;;  %v1893_v59 = vpop.f32.mrb[17].mxu1  ;;  %v1885_v60 = vpop.f32.mrb[17].mxu0 }
  0xfe   :  { %v590_v61 = vpop.f32.mrb[18].mxu1  ;;  %v547_v62 = vpop.f32.mrb[18].mxu0 }
  0xff   :  { %v1894_v63 = vpop.f32.mrb[19].mxu1  ;;  %1944 = vmatpush3.xpose.msk.msra.mxu0 %vm883_vm2, %v545_v57  ;;  %1949 = vmatpush3.xpose.msk.msra.mxu1 %vm883_vm2, %v588_v58  ;;  %v1886_v0 = vpop.f32.mrb[19].mxu0 }
 0x100   :  { %1953 = vmatprep.subr.mxu0 %v2066_v1  ;;  %1958 = vmatprep.subr.mxu1 %v2066_v1 }
 0x102   :  { %1946 = vmatmul.mubr.msk.f32.vlgmr.msra.gmra.mrb[32].mxu0 %vm883_vm2, %v147_v3  ;;  %1951 = vmatmul.mubr.msk.f32.vlgmr.msra.gmra.mrb[32].mxu1 %vm883_vm2, %v190_v2 }
 0x103   :  { %1955 = vmatprep.mubr.msk.f32.mxu0 %vm2067_vm0, %v2066_v1  ;;  %1960 = vmatprep.mubr.msk.f32.mxu1 %vm2067_vm0, %v2066_v1 }
 0x104   :  { %v639_v5 = vpop.f32.mrb[20].mxu0  ;;  %v679_v6 = vpop.f32.mrb[20].mxu1 }
 0x105   :  { %v640_v8 = vadd.f32 %v1714_v4, %v639_v5  ;;  %v680_v9 = vadd.f32 %v1714_v4, %v679_v6  ;;  %v1909_v10 = vpop.f32.mrb[21].mxu1  ;;  %v1901_v11 = vpop.f32.mrb[21].mxu0 }
 0x106   :  { %v682_v12 = vpop.f32.mrb[22].mxu1  ;;  %v642_v13 = vpop.f32.mrb[22].mxu0 }
 0x107   :  { %v1910_v14 = vpop.f32.mrb[23].mxu1  ;;  %1954 = vmatpush3.xpose.msk.msra.mxu0 %vm883_vm2, %v640_v8  ;;  %1959 = vmatpush3.xpose.msk.msra.mxu1 %vm883_vm2, %v680_v9  ;;  %v1902_v15 = vpop.f32.mrb[23].mxu0 }
 0x108   :  { %1963 = vmatprep.subr.mxu0 %v2066_v1  ;;  %1968 = vmatprep.subr.mxu1 %v2066_v1 }
 0x10a   :  { %1956 = vmatmul.mubr.msk.f32.vlgmr.msra.gmra.mrb[34].mxu0 %vm883_vm2, %v242_v17  ;;  %1961 = vmatmul.mubr.msk.f32.vlgmr.msra.gmra.mrb[34].mxu1 %vm883_vm2, %v282_v16 }
 0x10b   :  { %1965 = vmatprep.mubr.msk.f32.mxu0 %vm2067_vm0, %v2066_v1  ;;  %1970 = vmatprep.mubr.msk.f32.mxu1 %vm2067_vm0, %v2066_v1 }
 0x10c   :  { %v731_v19 = vpop.f32.mrb[24].mxu0  ;;  %v771_v20 = vpop.f32.mrb[24].mxu1 }
 0x10d   :  { %v732_v22 = vadd.f32 %v1715_v18, %v731_v19  ;;  %v772_v23 = vadd.f32 %v1715_v18, %v771_v20  ;;  %v1925_v24 = vpop.f32.mrb[25].mxu1  ;;  %v1917_v25 = vpop.f32.mrb[25].mxu0 }
 0x10e   :  { %v774_v26 = vpop.f32.mrb[26].mxu1  ;;  %v734_v27 = vpop.f32.mrb[26].mxu0 }
 0x10f   :  { %v1926_v28 = vpop.f32.mrb[27].mxu1  ;;  %1964 = vmatpush3.xpose.msk.msra.mxu0 %vm883_vm2, %v732_v22  ;;  %1969 = vmatpush3.xpose.msk.msra.mxu1 %vm883_vm2, %v772_v23  ;;  %v1918_v29 = vpop.f32.mrb[27].mxu0 }
 0x110   :  { %1973 = vmatprep.subr.mxu0 %v2066_v1  ;;  %1978 = vmatprep.subr.mxu1 %v2066_v1 }
 0x112   :  { %1966 = vmatmul.mubr.msk.f32.vlgmr.msra.gmra.mrb[36].mxu0 %vm883_vm2, %v334_v31  ;;  %1971 = vmatmul.mubr.msk.f32.vlgmr.msra.gmra.mrb[36].mxu1 %vm883_vm2, %v374_v30 }
 0x113   :  { %1975 = vmatprep.mubr.msk.f32.mxu0 %vm2067_vm0, %v2066_v1  ;;  %1980 = vmatprep.mubr.msk.f32.mxu1 %vm2067_vm0, %v2066_v1  ;;  %v466_v1 = vadd.f32 %v1696_v35, %v2267_v45 }
 0x114   :  { %v823_v33 = vpop.f32.mrb[28].mxu0  ;;  %v863_v34 = vpop.f32.mrb[28].mxu1 }
 0x115   :  { %v824_v36 = vadd.f32 %v1716_v32, %v823_v33  ;;  %v864_v37 = vadd.f32 %v1716_v32, %v863_v34  ;;  %v1941_v38 = vpop.f32.mrb[29].mxu1  ;;  %v1933_v39 = vpop.f32.mrb[29].mxu0 }
 0x116   :  { %v866_v40 = vpop.f32.mrb[30].mxu1  ;;  %v826_v41 = vpop.f32.mrb[30].mxu0 }
 0x117   :  { %v1942_v42 = vpop.f32.mrb[31].mxu1  ;;  %1974 = vmatpush3.xpose.msk.msra.mxu0 %vm883_vm2, %v824_v36  ;;  %1979 = vmatpush3.xpose.msk.msra.mxu1 %vm883_vm2, %v864_v37  ;;  %v1934_v43 = vpop.f32.mrb[31].mxu0 }
 0x11a   :  { %1976 = vmatmul.mubr.msk.f32.vlgmr.msra.gmra.mrb[38].mxu0 %vm883_vm2, %v426_v44  ;;  %1981 = vmatmul.mubr.msk.f32.vlgmr.msra.gmra.mrb[38].mxu1 %vm883_vm2, %v466_v1 }
 0x1d5   :  { %v956_v48 = vpop.f32.mrb[32].mxu0  ;;  %v1032_v50 = vpop.f32.mrb[32].mxu1 }
 0x1d6   :  { %v957_v51 = vadd.f32 %v1733_v47, %v956_v48  ;;  %v1947_v52 = vpop.f32.mrb[33].mxu0  ;;  %v1952_v53 = vpop.f32.mrb[33].mxu1  ;;  %v1033_v45 = vadd.f32 %v1734_v49, %v1032_v50 }
 0x1d8   :  { %v1492_v46 = vsel %vm883_vm2, %v957_v51, -inf  ;;  %v1495_v54 = vsel %vm883_vm2, %v1033_v45, -inf }
 0x1d9   :  { %1493 = vmax.xlane.f32.xlu0 %v1492_v46 }
 0x1dd   :  { %v1184_v55 = vpop.f32.mrb[34].mxu1  ;;  %1496 = vmax.xlane.f32.xlu0 %v1495_v54  ;;  %v1108_v56 = vpop.f32.mrb[34].mxu0 }
 0x1de   :  { %v1109_v57 = vadd.f32 %v1733_v47, %v1108_v56  ;;  %v1957_v58 = vpop.f32.mrb[35].mxu0  ;;  %v1962_v59 = vpop.f32.mrb[35].mxu1  ;;  %v1185_v60 = vadd.f32 %v1734_v49, %v1184_v55 }
 0x1e0   :  { %v1498_v61 = vsel %vm883_vm2, %v1109_v57, -inf  ;;  %v1501_v62 = vsel %vm883_vm2, %v1185_v60, -inf }
 0x1e1   :  { %1499 = vmax.xlane.f32.xlu1 %v1498_v61 }
 0x1e5   :  { %v1336_v63 = vpop.f32.mrb[36].mxu1  ;;  %1502 = vmax.xlane.f32.xlu1 %v1501_v62  ;;  %v1260_v0 = vpop.f32.mrb[36].mxu0 }
 0x1e6   :  { %v1337_v2 = vadd.f32 %v1734_v49, %v1336_v63  ;;  %v1261_v3 = vadd.f32 %v1733_v47, %v1260_v0  ;;  %v1967_v4 = vpop.f32.mrb[37].mxu0  ;;  %v1972_v5 = vpop.f32.mrb[37].mxu1 }
 0x1e8   :  { %v1507_v6 = vsel %vm883_vm2, %v1337_v2, -inf  ;;  %v1504_v7 = vsel %vm883_vm2, %v1261_v3, -inf }
 0x1e9   :  { %1508 = vmax.xlane.f32.xlu1 %v1507_v6  ;;  %1505 = vmax.xlane.f32.xlu0 %v1504_v7 }
 0x1ed   :  { %v1412_v8 = vpop.f32.mrb[38].mxu0  ;;  %v1488_v9 = vpop.f32.mrb[38].mxu1 }
 0x1ee   :  { %v1413_v10 = vadd.f32 %v1733_v47, %v1412_v8  ;;  %v1489_v11 = vadd.f32 %v1734_v49, %v1488_v9  ;;  %v1977_v12 = vpop.f32.mrb[39].mxu0  ;;  %v1982_v13 = vpop.f32.mrb[39].mxu1 }
 0x1f0   :  { %v1513_v14 = vsel %vm883_vm2, %v1489_v11, -inf  ;;  %v1510_v15 = vsel %vm883_vm2, %v1413_v10, -inf }
 0x1f1   :  { %1514 = vmax.xlane.f32.xlu1 %v1513_v14  ;;  %1511 = vmax.xlane.f32.xlu0 %v1510_v15 }
 0x266   :  { %v1494_v16 = vpop.xlane.xlu0 %1493 }
 0x267   :  { %v1516_v17 = vsub.f32 %v957_v51, %v1494_v16 }
 0x269   :  { %v1524_v18 = vmul.f32 1.442695, %v1516_v17 }
 0x26a   :  { %v1497_v19 = vpop.xlane.xlu0 %1496 }
 0x26b   :  { %2010 = vpow2.f32 %v1524_v18  ;;  %v1517_v20 = vsub.f32 %v1033_v45, %v1497_v19 }
 0x26d   :  { %v1526_v21 = vmul.f32 1.442695, %v1517_v20 }
 0x26e   :  { %v1500_v22 = vpop.xlane.xlu1 %1499 }
 0x26f   :  { %2012 = vpow2.f32 %v1526_v21  ;;  %v1518_v23 = vsub.f32 %v1109_v57, %v1500_v22 }
 0x271   :  { %v1528_v24 = vmul.f32 1.442695, %v1518_v23 }
 0x272   :  { %v1503_v25 = vpop.xlane.xlu1 %1502 }
 0x273   :  { %2014 = vpow2.f32 %v1528_v24  ;;  %v1519_v26 = vsub.f32 %v1185_v60, %v1503_v25 }
 0x275   :  { %v2347_v27 = vpop.eup %2010  ;;  %v1530_v28 = vmul.f32 1.442695, %v1519_v26 }
 0x276   :  { %v1509_v29 = vpop.xlane.xlu1 %1508  ;;  %v1506_v30 = vpop.xlane.xlu0 %1505  ;;  %v1540_v31 = vsel %vm883_vm2, %v2347_v27, 0.0 }
 0x277   :  { %2016 = vpow2.f32 %v1530_v28  ;;  %v1521_v32 = vsub.f32 %v1337_v2, %v1509_v29  ;;  %v1520_v33 = vsub.f32 %v1261_v3, %v1506_v30  ;;  %1541 = vadd.xlane.f32.xlu0 %v1540_v31 }
 0x279   :  { %v2013_v34 = vpop.eup %2012  ;;  %v1534_v35 = vmul.f32 1.442695, %v1521_v32  ;;  %v1532_v36 = vmul.f32 1.442695, %v1520_v33 }
 0x27a   :  { %v1543_v37 = vsel %vm883_vm2, %v2013_v34, 0.0 }
 0x27b   :  { %2018 = vpow2.f32 %v1534_v35  ;;  %1544 = vadd.xlane.f32.xlu1 %v1543_v37 }
 0x27c   :  { %2020 = vpow2.f32 %v1532_v36 }
 0x27d   :  { %v2015_v38 = vpop.eup %2014 }
 0x27e   :  { %v1515_v39 = vpop.xlane.xlu1 %1514  ;;  %v1512_v40 = vpop.xlane.xlu0 %1511  ;;  %v1546_v41 = vsel %vm883_vm2, %v2015_v38, 0.0 }
 0x27f   :  { %v1523_v42 = vsub.f32 %v1489_v11, %v1515_v39  ;;  %v1522_v43 = vsub.f32 %v1413_v10, %v1512_v40  ;;  %1547 = vadd.xlane.f32.xlu0 %v1546_v41 }
 0x281   :  { %v2017_v1 = vpop.eup %2016  ;;  %v1538_v44 = vmul.f32 1.442695, %v1523_v42  ;;  %v1536_v47 = vmul.f32 1.442695, %v1522_v43 }
 0x282   :  { %v1549_v48 = vsel %vm883_vm2, %v2017_v1, 0.0 }
 0x283   :  { %2022 = vpow2.f32 %v1538_v44  ;;  %1550 = vadd.xlane.f32.xlu1 %v1549_v48 }
 0x284   :  { %2024 = vpow2.f32 %v1536_v47 }
 0x285   :  { %v2019_v49 = vpop.eup %2018 }
 0x286   :  { %v2021_v50 = vpop.eup %2020  ;;  %v1555_v51 = vsel %vm883_vm2, %v2019_v49, 0.0 }
 0x287   :  { %1556 = vadd.xlane.f32.xlu1 %v1555_v51  ;;  %v1552_v52 = vsel %vm883_vm2, %v2021_v50, 0.0 }
 0x288   :  { %1553 = vadd.xlane.f32.xlu0 %v1552_v52 }
 0x28d   :  { %v2023_v53 = vpop.eup %2022 }
 0x28e   :  { %v2025_v45 = vpop.eup %2024  ;;  %v1561_v46 = vsel %vm883_vm2, %v2023_v53, 0.0 }
 0x28f   :  { %1562 = vadd.xlane.f32.xlu1 %v1561_v46  ;;  %v1558_v54 = vsel %vm883_vm2, %v2025_v45, 0.0 }
 0x290   :  { %1559 = vadd.xlane.f32.xlu0 %v1558_v54 }
 0x304   :  { %v1542_v56 = vpop.xlane.xlu0 %1541 }
 0x305   :  { %2026 = vrcp.f32 %v1542_v56 }
 0x308   :  { %v1545_v55 = vpop.xlane.xlu1 %1544 }
 0x309   :  { %2028 = vrcp.f32 %v1545_v55 }
 0x30c   :  { %v1548_v58 = vpop.xlane.xlu0 %1547 }
 0x30f   :  { %v2027_v61 = vpop.eup %2026 }
 0x310   :  { %v1551_v57 = vpop.xlane.xlu1 %1550  ;;  %v1565_v10 = vmul.f32 %v2027_v61, %v2347_v27 }
 0x311   :  { %2030 = vrcp.f32 %v1551_v57 }
 0x312   :  { %2032 = vrcp.f32 %v1548_v58  ;;  %v1580_v17 = vsel %vm883_vm2, %v1565_v10, 0.0 }
 0x313   :  { %v2029_v62 = vpop.eup %2028 }
 0x314   :  { %v1557_v59 = vpop.xlane.xlu1 %1556  ;;  %v1567_v8 = vmul.f32 %v2029_v62, %v2013_v34 }
 0x315   :  { %2034 = vrcp.f32 %v1557_v59  ;;  %v1554_v60 = vpop.xlane.xlu0 %1553 }
 0x316   :  { %2036 = vrcp.f32 %v1554_v60  ;;  %v1587_v14 = vsel %vm883_vm2, %v1567_v8, 0.0 }
 0x31b   :  { %v2031_v0 = vpop.eup %2030 }
 0x31c   :  { %v1563_v63 = vpop.xlane.xlu1 %1562  ;;  %v2033_v3 = vpop.eup %2032  ;;  %v1571_v6 = vmul.f32 %v2031_v0, %v2017_v1 }
 0x31d   :  { %2038 = vrcp.f32 %v1563_v63  ;;  %v1560_v2 = vpop.xlane.xlu0 %1559  ;;  %v1569_v7 = vmul.f32 %v2033_v3, %v2015_v38 }
 0x31e   :  { %2040 = vrcp.f32 %v1560_v2  ;;  %v1588_v12 = vsel %vm883_vm2, %v1571_v6, 0.0 }
 0x31f   :  { %v2035_v4 = vpop.eup %2034  ;;  %v1581_v13 = vsel %vm883_vm2, %v1569_v7, 0.0  ;;  %v1589_v18 = vadd.f32 %v1588_v12, %v1587_v14 }
 0x320   :  { %v2037_v5 = vpop.eup %2036  ;;  %v1575_v9 = vmul.f32 %v2035_v4, %v2019_v49  ;;  %v1582_v21 = vadd.f32 %v1581_v13, %v1580_v17 }
 0x321   :  { %v1573_v11 = vmul.f32 %v2037_v5, %v2021_v50 }
 0x322   :  { %v1590_v15 = vsel %vm883_vm2, %v1575_v9, 0.0 }
 0x323   :  { %v1583_v19 = vsel %vm883_vm2, %v1573_v11, 0.0  ;;  %v1591_v23 = vadd.f32 %v1590_v15, %v1589_v18 }
 0x324   :  { %v1584_v25 = vadd.f32 %v1583_v19, %v1582_v21 }
 0x327   :  { %v2039_v16 = vpop.eup %2038 }
 0x328   :  { %v2041_v20 = vpop.eup %2040  ;;  %v1579_v22 = vmul.f32 %v2039_v16, %v2023_v53 }
 0x329   :  { %v1577_v24 = vmul.f32 %v2041_v20, %v2025_v45 }
 0x32a   :  { %v1592_v26 = vsel %vm883_vm2, %v1579_v22, 0.0 }
 0x32b   :  { %v1593_v27 = vadd.f32 %v1592_v26, %v1591_v23  ;;  %v1585_v28 = vsel %vm883_vm2, %v1577_v24, 0.0 }
 0x32c   :  { %v1586_v29 = vadd.f32 %v1585_v28, %v1584_v25 }
 0x32d   :  { %v2367_v30 = vmul.f32 0.25, %v1593_v27 }
 0x32e   :  { %v1595_v31 = vmul.f32 0.25, %v1586_v29 }
 0x32f   :  { %v1600_v32 = vrot.slane %v2367_v30, 1  ;;  %v1608_v36 = vrot.slane %v2367_v30, 2  ;;  %v1616_v38 = vrot.slane %v2367_v30, 3  ;;  %v1624_v40 = vrot.slane %v2367_v30, 4 }
 0x330   :  { %v1599_v33 = vrot.slane %v1595_v31, 1  ;;  %v1607_v34 = vrot.slane %v1595_v31, 2  ;;  %v1615_v35 = vrot.slane %v1595_v31, 3  ;;  %v1623_v37 = vrot.slane %v1595_v31, 4 }
 0x331   :  { %1603 = vrot.lane.b32.xlu1 %v1600_v32, %s2068_s6  ;;  %v1631_v39 = vrot.slane %v1595_v31, 5  ;;  %v1639_v41 = vrot.slane %v1595_v31, 6  ;;  %v1632_v42 = vrot.slane %v2367_v30, 5  ;;  %v1647_v43 = vrot.slane %v1595_v31, 7 }
 0x332   :  { %1601 = vrot.lane.b32.xlu0 %v1599_v33, %s2068_s6  ;;  %v1640_v1 = vrot.slane %v2367_v30, 6  ;;  %v1648_v44 = vrot.slane %v2367_v30, 7 }
 0x335   :  { %1609 = vrot.lane.b32.xlu1 %v1607_v34, %s2069_s30 }
 0x336   :  { %1617 = vrot.lane.b32.xlu0 %v1615_v35, %s2070_s1 }
 0x339   :  { %1611 = vrot.lane.b32.xlu1 %v1608_v36, %s2069_s30 }
 0x33a   :  { %1625 = vrot.lane.b32.xlu0 %v1623_v37, %s2071_s8 }
 0x33d   :  { %1619 = vrot.lane.b32.xlu1 %v1616_v38, %s2070_s1 }
 0x33e   :  { %1633 = vrot.lane.b32.xlu0 %v1631_v39, %s2072_s9 }
 0x341   :  { %1627 = vrot.lane.b32.xlu1 %v1624_v40, %s2071_s8 }
 0x342   :  { %1641 = vrot.lane.b32.xlu0 %v1639_v41, %s2073_s10 }
 0x345   :  { %1635 = vrot.lane.b32.xlu1 %v1632_v42, %s2072_s9 }
 0x346   :  { %1649 = vrot.lane.b32.xlu0 %v1647_v43, %s2074_s11 }
 0x349   :  { %1643 = vrot.lane.b32.xlu1 %v1640_v1, %s2073_s10 }
 0x34d   :  { %1651 = vrot.lane.b32.xlu1 %v1648_v44, %s2074_s11 }
 0x3a3   :  { %v1604_v47 = vpop.permute.xlu1 %1603 }
 0x3a4   :  { %v1602_v48 = vpop.permute.xlu0 %1601  ;;  %v1656_v0 = vsel %vm883_vm2, %v2367_v30, %v1604_v47 }
 0x3a5   :  { %v1655_v46 = vsel %vm883_vm2, %v1595_v31, %v1602_v48 }
 0x3a7   :  { %v1610_v49 = vpop.permute.xlu1 %1609 }
 0x3a8   :  { %v1618_v50 = vpop.permute.xlu0 %1617  ;;  %v1658_v54 = vsel %vm1657_vm3, %v1655_v46, %v1610_v49 }
 0x3a9   :  { %v1661_v57 = vsel %vm1660_vm4, %v1658_v54, %v1618_v50 }
 0x3ab   :  { %v1612_v51 = vpop.permute.xlu1 %1611 }
 0x3ac   :  { %v1626_v52 = vpop.permute.xlu0 %1625  ;;  %v1659_v2 = vsel %vm1657_vm3, %v1656_v0, %v1612_v51 }
 0x3ad   :  { %v1663_v58 = vsel %vm108_vm1, %v1661_v57, %v1626_v52 }
 0x3af   :  { %v1620_v53 = vpop.permute.xlu1 %1619 }
 0x3b0   :  { %v1634_v45 = vpop.permute.xlu0 %1633  ;;  %v1662_v4 = vsel %vm1660_vm4, %v1659_v2, %v1620_v53 }
 0x3b1   :  { %v1666_v59 = vsel %vm1665_vm5, %v1663_v58, %v1634_v45 }
 0x3b3   :  { %v1628_v55 = vpop.permute.xlu1 %1627 }
 0x3b4   :  { %v1642_v56 = vpop.permute.xlu0 %1641  ;;  %v1664_v5 = vsel %vm108_vm1, %v1662_v4, %v1628_v55 }
 0x3b5   :  { %v1669_v61 = vsel %vm1668_vm6, %v1666_v59, %v1642_v56 }
 0x3b7   :  { %v1636_v60 = vpop.permute.xlu1 %1635 }
 0x3b8   :  { %v1650_v62 = vpop.permute.xlu0 %1649  ;;  %v1667_v6 = vsel %vm1665_vm5, %v1664_v5, %v1636_v60 }
 0x3b9   :  { %v1672_v63 = vsel %vm1671_vm7, %v1669_v61, %v1650_v62 }
 0x3ba   :  { %1675 = vst.msk [vmem:[#allocation2] sm:$0x1] %vm1674_vm8, %v1672_v63 }
 0x3bb   :  { %v1644_v3 = vpop.permute.xlu1 %1643 }
 0x3bc   :  { %v1670_v7 = vsel %vm1668_vm6, %v1667_v6, %v1644_v3 }
 0x3bf   :  { %v1652_v8 = vpop.permute.xlu1 %1651 }
 0x3c0   :  { %v1673_v9 = vsel %vm1671_vm7, %v1670_v7, %v1652_v8 }
 0x3c1   :  { %1676 = vst.msk [vmem:[#allocation2 + $0x1] sm:$0x1] %vm1674_vm8, %v1673_v9 }
 0x3c2   :  { %2053 = shalt.err (!%p2050_p4)
}
 0x3c3   :  { %s2054_s15 = scalar_lea.hbm %s2416_s7, 32 }
 0x3c4   :  { %p2055_p5 = scmp.ne.s32.totalorder %s2416_s7, %s2054_s15  ;;  %p2058_p6 = scmp.lt.u32.totalorder %s2054_s15, %s2416_s7 }
 0x3c6   :  { %p2060_p7 = pnand %p2058_p6, %p2055_p5 }
 0x3c8   :  { %2063 = shalt.err (!%p2060_p7)
}
 0x3c9   :  { %s2076_s20 = smov 1  }
 0x3ca   :  { %1688 = dma.vmem_to_hbm [thread:$0]  %s1683_s0, 32, %s2416_s7, [#allocation3], %s2069_s30, %s2069_s30, %s2076_s20  }
 0x3cb   :  { %2064 = dma.done.wait [#allocation3], 32  }
 0x3cc   :  { %2065 = vsyncadd [#allocation3], 4294967264 }
 0x3cd   :  { %1692 = vsyncpa [#allocation3], 1 }

</bundles_post_ra>
